<compile_context>
chip_gen: v5e
topology: v5e:2x2
jax: 0.10.0
libtpu: 0.0.40
codegen_flags: <defaults>
</compile_context>

<pallas_src>
import functools

import numpy as np

import jax
import jax.numpy as jnp
from jax import lax
from jax.experimental import pallas as pl
from jax.experimental.pallas import tpu as pltpu


_NEG_BIG = -1.0e30  # finite "-inf" so masked entries never create inf/NaN math


def _round_up(x, m):
    return ((x + m - 1) // m) * m


def _device_vmem_budget():
    """Generation-aware scoped-VMEM budget.

    ~56 MiB on v7x (64 MiB physical VMEM per TensorCore), ~112 MiB on v5e/v6e
    (128 MiB physical).  Conservative fallback if the query fails.
    """
    cap = 0
    try:
        info = pltpu.get_tpu_info()
        cap = int(getattr(info, "vmem_capacity_bytes", 0) or 0)
    except Exception:
        cap = 0
    if cap <= 0:
        cap = 64 << 20
    return int(max(32 << 20, min(cap - (8 << 20), 112 << 20)))


def _bf16_eup_supported():
    """bf16 EUP/VPU exists on v6e/v7x; on v5e (and older) bf16 exp only adds casts."""
    try:
        kind = jax.devices()[0].device_kind.lower()
    except Exception:
        return True
    for old in ("v2", "v3", "v4", "v5"):
        if old in kind:
            return False
    return True


def _auto_tile(length, max_tile, want_split):
    """Largest multiple-of-128 tile <= max_tile covering `length`.

    If want_split, prefer >= 2 tiles along the axis so a 'parallel' grid
    dimension of extent >= 2 survives (megacore sharding on 2-TC chips).
    """
    l128 = _round_up(max(int(length), 1), 128)
    t = min(int(max_tile), l128)
    if want_split and t == l128 and l128 > 128:
        t = _round_up(-(-l128 // 2), 128)
    return int(t)


# ---------------------------------------------------------------------------
# Kernel 1: fused q/k/v projection (three 1x1x1 convs == one stacked matmul)
# ---------------------------------------------------------------------------
def _proj_kernel(x_ref, wqkv_ref, q_ref, k_ref, v_ref):
    # x_ref:    (1, C, TL)   channel-first, L on lanes
    # wqkv_ref: (3*Ch, C)    stacked [Wq; Wk; Wv], compute dtype (bf16 MXU path)
    ch = q_ref.shape[1]
    qkv = jnp.dot(wqkv_ref[...], x_ref[0].astype(wqkv_ref.dtype),
                  preferred_element_type=jnp.float32)            # (3*Ch, TL)
    q_ref[0] = qkv[0 * ch:1 * ch, :].astype(q_ref.dtype)
    k_ref[0] = qkv[1 * ch:2 * ch, :].astype(k_ref.dtype)
    v_ref[0] = qkv[2 * ch:3 * ch, :].astype(v_ref.dtype)


# ---------------------------------------------------------------------------
# Kernel 2: per-row (j) softmax statistics over the output axis l
#           lse[j] = log sum_l exp(s[j, l]),  s[j, l] = sum_ch K[ch,j] Q[ch,l]
# grid = (n, L//TJ, L//TL), reduction over l (innermost, "arbitrary")
# ---------------------------------------------------------------------------
def _lse_kernel(k_ref, q_ref, lse_ref, m_sc, d_sc, *, true_l, needs_mask,
                exp_dtype):
    l_step = pl.program_id(2)
    tl = q_ref.shape[-1]

    @pl.when(l_step == 0)
    def _():
        m_sc[...] = jnp.full(m_sc.shape, -jnp.inf, dtype=m_sc.dtype)
        d_sc[...] = jnp.zeros(d_sc.shape, dtype=d_sc.dtype)

    # Contract the channel (sublane) axis of K and Q directly; no transpose.
    s = lax.dot_general(k_ref[0], q_ref[0],
                        dimension_numbers=(((0,), (0,)), ((), ())),
                        preferred_element_type=jnp.float32)      # (TJ, TL) f32

    if needs_mask:
        col = lax.broadcasted_iota(jnp.int32, (1, tl), 1) + l_step * tl
        valid = col < true_l                                     # (1, TL)
        s = jnp.where(valid, s, _NEG_BIG)

    m_old = m_sc[...]
    m_new = jnp.maximum(m_old, jnp.max(s, axis=-1, keepdims=True))
    # exp runs on the EUP in exp_dtype (bf16 on v6e/v7x); running stats in f32.
    p = jnp.exp((s - m_new).astype(exp_dtype))
    if needs_mask:
        # Exclude padded columns from the sum even if a whole tile is padding.
        p = jnp.where(valid, p, 0.0)
    # Row-sum offloaded to the (underused) MXU via a ones-column contraction so
    # the lane reduction does not burn VPU/XLU slots next to the exp.
    row_sum = jnp.dot(p, jnp.ones((tl, 1), dtype=p.dtype),
                      preferred_element_type=jnp.float32)        # (TJ, 1) f32
    d_sc[...] = d_sc[...] * jnp.exp(m_old - m_new) + row_sum
    m_sc[...] = m_new

    @pl.when(l_step == pl.num_programs(2) - 1)
    def _():
        lse_ref[0] = m_sc[...] + jnp.log(d_sc[...])              # (TJ, 1)


# ---------------------------------------------------------------------------
# Kernel 3: attention output + post 1x1x1 conv + residual
#           out[:, l] = Wp @ (sum_j V[:, j] * exp(s[j, l] - lse[j])) + x[:, l]
# grid = (n, L//TL, L//TJ), reduction over j (innermost, "arbitrary")
# ---------------------------------------------------------------------------
def _attn_out_kernel(lse_ref, k_ref, q_ref, v_ref, x_ref, wp_ref, o_ref,
                     acc_sc, *, exp_dtype):
    j_step = pl.program_id(2)

    @pl.when(j_step == 0)
    def _():
        acc_sc[...] = jnp.zeros(acc_sc.shape, dtype=acc_sc.dtype)

    s = lax.dot_general(k_ref[0], q_ref[0],
                        dimension_numbers=(((0,), (0,)), ((), ())),
                        preferred_element_type=jnp.float32)      # (TJ, TL) f32
    # Softmax via precomputed row log-sum-exp: already normalized, no divide.
    # exp in exp_dtype (bf16 on v6e/v7x) feeds the bf16 MXU directly.  Padded
    # l columns (if any) are column-independent garbage that the wrapper
    # slices away, so no masking is needed here.
    p = jnp.exp((s - lse_ref[0]).astype(exp_dtype))
    acc_sc[...] += jnp.dot(v_ref[0], p.astype(v_ref.dtype),
                           preferred_element_type=jnp.float32)   # (Ch, TL)

    @pl.when(j_step == pl.num_programs(2) - 1)
    def _():
        out = jnp.dot(wp_ref[...], acc_sc[...].astype(wp_ref.dtype),
                      preferred_element_type=jnp.float32) + x_ref[0]
        o_ref[0] = out.astype(o_ref.dtype)


# ---------------------------------------------------------------------------
# Wrapper
# ---------------------------------------------------------------------------
def nonlocal_pallas(x_ncdhw, wq, wk, wv, wp, *, compute_dtype=jnp.bfloat16,
                    tile_l=None, tile_j=None, vmem_limit_bytes=None):
    n, c, d, h, w = x_ncdhw.shape
    L = d * h * w
    ch = wq.shape[0]
    cd_size = np.dtype(compute_dtype).itemsize

    budget = (int(vmem_limit_bytes) if vmem_limit_bytes is not None
              else _device_vmem_budget())
    # 2048 tiles only where 128 MiB physical VMEM allows it (v5e/v6e); on
    # v7x-sized budgets cap at 1024 so the f32 score tile + exp copies fit.
    max_tile = 2048 if budget >= (96 << 20) else 1024
    # On v7x (2 TensorCores, small-budget proxy) with batch==1, keep a parallel
    # grid axis of extent >= 2 so both cores are used.
    want_split = (n == 1) and (budget < (96 << 20))

    tl = int(tile_l) if tile_l is not None else _auto_tile(L, max_tile, want_split)
    tj = int(tile_j) if tile_j is not None else _auto_tile(L, max_tile, want_split)
    assert tl % 128 == 0 and tj % 128 == 0, "tiles must be multiples of 128"

    L_pad = int(_round_up(L, int(np.lcm(tl, tj))))
    n_l = L_pad // tl
    n_j = L_pad // tj
    needs_mask = L_pad != L

    use_bf16 = np.dtype(compute_dtype) == np.dtype(jnp.bfloat16)
    exp_dtype = compute_dtype if (use_bf16 and _bf16_eup_supported()) else jnp.float32

    # channel-first flatten: (N, C, L) — matches torch .view, NO transpose.
    # Zero-pad L so every tile is 128-aligned; padded q/k/v columns are exactly
    # zero (pass 1 masks them; pass 2's padded output columns are discarded).
    x = x_ncdhw.reshape(n, c, L)
    if needs_mask:
        x = jnp.pad(x, ((0, 0), (0, 0), (0, L_pad - L)))

    def cparams(sem):
        return pltpu.CompilerParams(dimension_semantics=sem,
                                    vmem_limit_bytes=budget)

    # ---- fused q/k/v projection (one stacked matmul, compute-dtype MXU path)
    w_qkv = jnp.concatenate([wq, wk, wv], axis=0).astype(compute_dtype)
    proj_cost = pl.CostEstimate(
        flops=int(2 * n * L_pad * c * 3 * ch),
        transcendentals=0,
        bytes_accessed=int(n * L_pad * c * 4 + 3 * n * L_pad * ch * cd_size
                           + 3 * ch * c * cd_size))
    q, k, v = pl.pallas_call(
        _proj_kernel,
        out_shape=tuple(jax.ShapeDtypeStruct((n, ch, L_pad), compute_dtype)
                        for _ in range(3)),
        grid_spec=pltpu.PrefetchScalarGridSpec(
            num_scalar_prefetch=0,
            grid=(n, n_l),
            in_specs=[
                pl.BlockSpec((1, c, tl), lambda b, l: (b, 0, l)),
                pl.BlockSpec((3 * ch, c), lambda b, l: (0, 0)),
            ],
            out_specs=[pl.BlockSpec((1, ch, tl), lambda b, l: (b, 0, l))
                       for _ in range(3)],
        ),
        compiler_params=cparams(("parallel", "parallel")),
        cost_estimate=proj_cost,
    )(x, w_qkv)

    # ---- pass 1: per-row log-sum-exp over the output axis l ----
    lse_cost = pl.CostEstimate(
        flops=int(2 * n * L_pad * L_pad * (ch + 1)),
        transcendentals=int(n * L_pad * L_pad),
        bytes_accessed=int(n * L_pad * ch * cd_size * (1 + n_j) + n * L_pad * 4))
    lse_kernel = functools.partial(_lse_kernel, true_l=int(L),
                                   needs_mask=needs_mask, exp_dtype=exp_dtype)
    lse = pl.pallas_call(
        lse_kernel,
        out_shape=jax.ShapeDtypeStruct((n, L_pad, 1), jnp.float32),
        grid_spec=pltpu.PrefetchScalarGridSpec(
            num_scalar_prefetch=0,
            grid=(n, n_j, n_l),
            in_specs=[
                pl.BlockSpec((1, ch, tj), lambda b, j, l: (b, 0, j)),  # K
                pl.BlockSpec((1, ch, tl), lambda b, j, l: (b, 0, l)),  # Q
            ],
            out_specs=pl.BlockSpec((1, tj, 1), lambda b, j, l: (b, j, 0)),
            scratch_shapes=[pltpu.VMEM((tj, 1), jnp.float32),
                            pltpu.VMEM((tj, 1), jnp.float32)],
        ),
        compiler_params=cparams(("parallel", "parallel", "arbitrary")),
        cost_estimate=lse_cost,
    )(k, q)

    # ---- pass 2: attention output accumulated over j + post conv + residual
    wp_c = wp.astype(compute_dtype)
    out_cost = pl.CostEstimate(
        flops=int(4 * n * L_pad * L_pad * ch + 2 * n * L_pad * ch * c),
        transcendentals=int(n * L_pad * L_pad),
        bytes_accessed=int(n * (2 * n_l + 1) * L_pad * ch * cd_size
                           + n * n_l * L_pad * 4 + 2 * n * L_pad * c * 4))
    attn_kernel = functools.partial(_attn_out_kernel, exp_dtype=exp_dtype)
    out = pl.pallas_call(
        attn_kernel,
        out_shape=jax.ShapeDtypeStruct((n, c, L_pad), x.dtype),
        grid_spec=pltpu.PrefetchScalarGridSpec(
            num_scalar_prefetch=0,
            grid=(n, n_l, n_j),
            in_specs=[
                pl.BlockSpec((1, tj, 1), lambda b, l, j: (b, j, 0)),   # lse
                pl.BlockSpec((1, ch, tj), lambda b, l, j: (b, 0, j)),  # K
                pl.BlockSpec((1, ch, tl), lambda b, l, j: (b, 0, l)),  # Q
                pl.BlockSpec((1, ch, tj), lambda b, l, j: (b, 0, j)),  # V
                pl.BlockSpec((1, c, tl), lambda b, l, j: (b, 0, l)),   # x (res)
                pl.BlockSpec((c, ch), lambda b, l, j: (0, 0)),         # Wp
            ],
            out_specs=pl.BlockSpec((1, c, tl), lambda b, l, j: (b, 0, l)),
            scratch_shapes=[pltpu.VMEM((ch, tl), jnp.float32)],
        ),
        compiler_params=cparams(("parallel", "parallel", "arbitrary")),
        cost_estimate=out_cost,
    )(lse, k, q, v, x, wp_c)

    if needs_mask:
        out = out[:, :, :L]
    return out.reshape(n, c, d, h, w)


# ---------------------------------------------------------------------------
# Pure-JAX reference mirroring the PyTorch forward exactly (NCDHW)
# ---------------------------------------------------------------------------
def nonlocal_ref(x_ncdhw, wq, wk, wv, wp):
    n, c, d, h, w = x_ncdhw.shape
    L = d * h * w
    x = x_ncdhw.reshape(n, c, L)                       # (n, C, L)
    q = jnp.einsum('oc,ncl->nol', wq, x)               # (n, Ch, L)
    k = jnp.einsum('oc,ncl->nol', wk, x)               # (n, Ch, L)
    v = jnp.einsum('oc,ncl->nol', wv, x)               # (n, Ch, L)
    kT = jnp.transpose(k, (0, 2, 1))                   # (n, L, Ch)
    attn = jax.nn.softmax(jnp.matmul(kT, q), axis=2)   # (n, L, L)
    vo = jnp.matmul(v, attn)                           # (n, Ch, L)
    out = jnp.einsum('co,nol->ncl', wp, vo) + x        # (n, C, L)
    return out.reshape(n, c, d, h, w)


if __name__ == "__main__":
    key = jax.random.PRNGKey(0)
    keys = jax.random.split(key, 15)

    # ---- test 1 & 2: toy shape (L=32 -> padded to 128), f32 exact + bf16 ----
    N, C, D, H, W = 2, 4, 2, 4, 4          # inchannel=4 -> Ch=2, L=32
    Ch = C // 2
    x = jax.random.normal(keys[0], (N, C, D, H, W), dtype=jnp.float32)
    wq = jax.random.normal(keys[1], (Ch, C), dtype=jnp.float32) * 0.1
    wk = jax.random.normal(keys[2], (Ch, C), dtype=jnp.float32) * 0.1
    wv = jax.random.normal(keys[3], (Ch, C), dtype=jnp.float32) * 0.1
    wp = jax.random.normal(keys[4], (C, Ch), dtype=jnp.float32) * 0.1

    ref = jax.block_until_ready(nonlocal_ref(x, wq, wk, wv, wp))

    out_f32 = jax.block_until_ready(
        nonlocal_pallas(x, wq, wk, wv, wp, compute_dtype=jnp.float32))
    assert out_f32.shape == (N, C, D, H, W)
    assert jnp.allclose(out_f32, ref, atol=1e-4, rtol=1e-4), "f32 mismatch"

    out_bf16 = jax.block_until_ready(
        nonlocal_pallas(x, wq, wk, wv, wp))            # default bf16 MXU path
    assert jnp.allclose(out_bf16, ref, atol=2e-2, rtol=2e-2), "bf16 mismatch"

    # ---- test 3: multi-tile grid (L=256, 128-tiles -> 2x2 reduction grid) ----
    N2, C2, D2, H2, W2 = 1, 8, 4, 8, 8     # Ch=4, L=256
    Ch2 = C2 // 2
    x2 = jax.random.normal(keys[5], (N2, C2, D2, H2, W2), dtype=jnp.float32)
    wq2 = jax.random.normal(keys[6], (Ch2, C2), dtype=jnp.float32) * 0.1
    wk2 = jax.random.normal(keys[7], (Ch2, C2), dtype=jnp.float32) * 0.1
    wv2 = jax.random.normal(keys[8], (Ch2, C2), dtype=jnp.float32) * 0.1
    wp2 = jax.random.normal(keys[9], (C2, Ch2), dtype=jnp.float32) * 0.1

    ref2 = jax.block_until_ready(nonlocal_ref(x2, wq2, wk2, wv2, wp2))
    out2 = jax.block_until_ready(
        nonlocal_pallas(x2, wq2, wk2, wv2, wp2,
                        compute_dtype=jnp.float32, tile_l=128, tile_j=128))
    assert jnp.allclose(out2, ref2, atol=1e-4, rtol=1e-4), "tiled mismatch"

    # ---- test 4: non-128-divisible L (L=200 -> padded 256, masked) ----
    N3, C3, D3, H3, W3 = 1, 8, 2, 10, 10   # Ch=4, L=200
    Ch3 = C3 // 2
    x3 = jax.random.normal(keys[10], (N3, C3, D3, H3, W3), dtype=jnp.float32)
    wq3 = jax.random.normal(keys[11], (Ch3, C3), dtype=jnp.float32) * 0.1
    wk3 = jax.random.normal(keys[12], (Ch3, C3), dtype=jnp.float32) * 0.1
    wv3 = jax.random.normal(keys[13], (Ch3, C3), dtype=jnp.float32) * 0.1
    wp3 = jax.random.normal(keys[14], (C3, Ch3), dtype=jnp.float32) * 0.1

    ref3 = jax.block_until_ready(nonlocal_ref(x3, wq3, wk3, wv3, wp3))
    out3 = jax.block_until_ready(
        nonlocal_pallas(x3, wq3, wk3, wv3, wp3,
                        compute_dtype=jnp.float32, tile_l=128, tile_j=128))
    assert jnp.allclose(out3, ref3, atol=1e-4, rtol=1e-4), "padded-L mismatch"

    print("KERNEL_OK")
</pallas_src>

<mosaic_0001>
module attributes {stable_mosaic.version = 11 : i64} {
  func.func @_proj_kernel(%arg0: i32, %arg1: i32, %arg2: memref<1x4x128xf32, #tpu.memory_space<vmem>>, %arg3: memref<6x4xf32, #tpu.memory_space<vmem>>, %arg4: memref<1x2x128xf32, #tpu.memory_space<vmem>>, %arg5: memref<1x2x128xf32, #tpu.memory_space<vmem>>, %arg6: memref<1x2x128xf32, #tpu.memory_space<vmem>>) attributes {dimension_semantics = [#tpu.dimension_semantics<parallel>, #tpu.dimension_semantics<parallel>], iteration_bounds = array<i64: 2, 1>, scalar_prefetch = 0 : i64, scratch_operands = 0 : i64, tpu.core_type = #tpu.core_type<tc>, window_params = [{transform_indices = @transform_0, window_bounds = array<i64: 1, 4, 128>}, {pipeline_mode = #tpu.pipeline_mode<synchronous>, transform_indices = @transform_1, window_bounds = array<i64: 6, 4>}, {transform_indices = @transform_2, window_bounds = array<i64: 1, 2, 128>}, {transform_indices = @transform_3, window_bounds = array<i64: 1, 2, 128>}, {transform_indices = @transform_4, window_bounds = array<i64: 1, 2, 128>}]} {
    %c0 = arith.constant 0 : index
    %c0_0 = arith.constant 0 : index
    %0 = vector.load %arg3[%c0, %c0_0] : memref<6x4xf32, #tpu.memory_space<vmem>>, vector<6x4xf32>
    %c0_1 = arith.constant 0 : index
    %c0_2 = arith.constant 0 : index
    %c0_3 = arith.constant 0 : index
    %1 = vector.load %arg2[%c0_1, %c0_2, %c0_3] : memref<1x4x128xf32, #tpu.memory_space<vmem>>, vector<1x4x128xf32>
    %2 = vector.shape_cast %1 : vector<1x4x128xf32> to vector<4x128xf32>
    %cst = arith.constant dense<0.000000e+00> : vector<6x128xf32>
    %3 = tpu.matmul %0, %2, %cst {dimension_numbers = #tpu.dot_dimension_numbers<[1], [0], [0], [1], [0, 0, 1, 1], [], []>} : vector<6x4xf32>, vector<4x128xf32>, vector<6x128xf32> -> vector<6x128xf32>
    %4 = vector.extract_strided_slice %3 {offsets = [0, 0], sizes = [2, 128], strides = [1, 1]} : vector<6x128xf32> to vector<2x128xf32>
    %c0_4 = arith.constant 0 : index
    %c0_5 = arith.constant 0 : index
    %c0_6 = arith.constant 0 : index
    %5 = vector.load %arg4[%c0_4, %c0_5, %c0_6] : memref<1x2x128xf32, #tpu.memory_space<vmem>>, vector<1x2x128xf32>
    %6 = vector.shape_cast %5 : vector<1x2x128xf32> to vector<2x128xf32>
    %7 = vector.shape_cast %4 : vector<2x128xf32> to vector<1x2x128xf32>
    tpu.vector_store %arg4[%c0_4, %c0_5, %c0_6], %7 {strides = array<i32>} : memref<1x2x128xf32, #tpu.memory_space<vmem>>, vector<1x2x128xf32>,
    %8 = vector.extract_strided_slice %3 {offsets = [2, 0], sizes = [2, 128], strides = [1, 1]} : vector<6x128xf32> to vector<2x128xf32>
    %c0_7 = arith.constant 0 : index
    %c0_8 = arith.constant 0 : index
    %c0_9 = arith.constant 0 : index
    %9 = vector.load %arg5[%c0_7, %c0_8, %c0_9] : memref<1x2x128xf32, #tpu.memory_space<vmem>>, vector<1x2x128xf32>
    %10 = vector.shape_cast %9 : vector<1x2x128xf32> to vector<2x128xf32>
    %11 = vector.shape_cast %8 : vector<2x128xf32> to vector<1x2x128xf32>
    tpu.vector_store %arg5[%c0_7, %c0_8, %c0_9], %11 {strides = array<i32>} : memref<1x2x128xf32, #tpu.memory_space<vmem>>, vector<1x2x128xf32>,
    %12 = vector.extract_strided_slice %3 {offsets = [4, 0], sizes = [2, 128], strides = [1, 1]} : vector<6x128xf32> to vector<2x128xf32>
    %c0_10 = arith.constant 0 : index
    %c0_11 = arith.constant 0 : index
    %c0_12 = arith.constant 0 : index
    %13 = vector.load %arg6[%c0_10, %c0_11, %c0_12] : memref<1x2x128xf32, #tpu.memory_space<vmem>>, vector<1x2x128xf32>
    %14 = vector.shape_cast %13 : vector<1x2x128xf32> to vector<2x128xf32>
    %15 = vector.shape_cast %12 : vector<2x128xf32> to vector<1x2x128xf32>
    tpu.vector_store %arg6[%c0_10, %c0_11, %c0_12], %15 {strides = array<i32>} : memref<1x2x128xf32, #tpu.memory_space<vmem>>, vector<1x2x128xf32>,
    return
  }
  func.func @transform_0(%arg0: i32, %arg1: i32) -> (i32, i32, i32) {
    %c0_i32 = arith.constant 0 : i32
    %c0_i32_0 = arith.constant 0 : i32
    return %arg0, %c0_i32, %arg1 : i32, i32, i32
  }
  func.func @transform_1(%arg0: i32, %arg1: i32) -> (i32, i32) {
    %c0_i32 = arith.constant 0 : i32
    %c0_i32_0 = arith.constant 0 : i32
    %c0_i32_1 = arith.constant 0 : i32
    return %c0_i32, %c0_i32_0 : i32, i32
  }
  func.func @transform_2(%arg0: i32, %arg1: i32) -> (i32, i32, i32) {
    %c0_i32 = arith.constant 0 : i32
    %c0_i32_0 = arith.constant 0 : i32
    return %arg0, %c0_i32, %arg1 : i32, i32, i32
  }
  func.func @transform_3(%arg0: i32, %arg1: i32) -> (i32, i32, i32) {
    %c0_i32 = arith.constant 0 : i32
    %c0_i32_0 = arith.constant 0 : i32
    return %arg0, %c0_i32, %arg1 : i32, i32, i32
  }
  func.func @transform_4(%arg0: i32, %arg1: i32) -> (i32, i32, i32) {
    %c0_i32 = arith.constant 0 : i32
    %c0_i32_0 = arith.constant 0 : i32
    return %arg0, %c0_i32, %arg1 : i32, i32, i32
  }
}

</mosaic_0001>

<bundles_post_ra>
// kernel: tpu_custom_call.1
= control target key start
LH: loop header
LB: loop body
LE: loop exit
PB: predicated region body
PF: predicated region fallthrough
CT: control target
= control target key end

     0   :  { %s885_s0 = inlined_call_operand.vmem [shape: f32[2,4,128], index: 0, kind: input, shape index: {}]   ;;  %s886_s1 = inlined_call_operand.vmem [shape: f32[6,4], index: 1, kind: input, shape index: {}]   ;;  %s887_s2 = inlined_call_operand.hbm [shape: f32[2,2,128], index: 2, kind: output, shape index: {0}]   ;;  %s888_s3 = inlined_call_operand.hbm [shape: f32[2,2,128], index: 3, kind: output, shape index: {1}]   ;;  %s889_s4 = inlined_call_operand.hbm [shape: f32[2,2,128], index: 4, kind: output, shape index: {2}]  }
   0x1   :  { %892 = sst [smem:[#allocation9_spill]] %s885_s0 }
   0x2   :  { %893 = sst [smem:[#allocation10_spill]] %s886_s1 }
   0x3   :  { %10 = vsyncpa [#allocation3], 0 }
   0x4   :  { %12 = vsyncpa [#allocation3 + $0x1], 0 }
   0x5   :  { %13 = vsyncpa [#allocation5], 0 }
   0x6   :  { %15 = vsyncpa [#allocation5 + $0x1], 0  ;;  %s715_s15 = smov 0   ;;  %s717_s16 = smov 0  }
   0x7   :  { %s719_s17 = smov 0   ;;  %s721_s18 = smov 0  }
   0x8   :  { %s723_s19 = smov 0   ;;  %s725_s20 = smov 0  }
   0x9 LB: > { %s466_s21 = sadd.s32 4294967295, %s688_s20   ;;  %s890_s22 = sadd.s32 4294967294, %s688_s20   ;;  %s688_s20 = sphi %s725_s20, %s21_s20   ;;  %s684_s19 = sphi %s723_s19, %s904_s19   ;;  %s680_s18 = sphi %s721_s18, %s903_s18   ;;  %s676_s17 = sphi %s719_s17, %s902_s17   ;;  %s672_s16 = sphi %s717_s16, %s901_s16   ;;  %s668_s15 = sphi %s715_s15, %s900_s15  }
   0xa   : > { %s33_s23 = sadd.s32 1, %s684_s19  ;;  %s91_s24 = sadd.s32 1, %s676_s17 }
   0xb   : > { %p35_p0 = scmp.ge.s32.totalorder %s33_s23, 2  ;;  %p101_p1 = scmp.ne.s32.totalorder %s676_s17, %s672_s16 }
   0xc   : > { %p102_p2 = scmp.eq.s32.totalorder %s466_s21, 1  ;;  %p107_p3 = scmp.ne.s32.totalorder %s672_s16, %s668_s15 }
   0xd   : > { %s906_s23 = smov (%p35_p0, %s33_s23), 0  ;;  %p108_p5 = scmp.eq.s32.totalorder %s890_s22, 1 }
   0xe   : > { %p757_p4 = por %p102_p2, %p101_p1  ;;  %s86_s26 = ssub.s32 %s684_s19, %s906_s23 }
   0xf   : > { %p470_p6 = scmp.ge.s32.totalorder %s688_s20, 1  ;;  %p89_p7 = scmp.eq.s32.totalorder %s86_s26, 0 }
  0x10   : > { %p766_p8 = por %p108_p5, %p107_p3  ;;  %p195_p9 = scmp.lt.s32.totalorder %s688_s20, 3 }
  0x11   : > { %s772_s28 = scalar_select %p89_p7, %s676_s17, %s91_s24  }
  0x12   : > { %p196_p10 = pnand %p470_p6, %p195_p9 }
  0x13   : > { %p233_p11 = scmp.lt.s32.totalorder (!%p196_p10), %s680_s18, 1  ;;  %s896_s0 = sld [smem:[#allocation9_spill]] (!%p196_p10) }
  0x14   : > { %199 = sbr.rel (%p196_p10) target bundleno = 186 (0xba), region = 28  ;;  %s897_s1 = sld [smem:[#allocation10_spill]] (!%p196_p10) }
  0x15   : > { %s216_s10 = sand.u32 (!%p196_p10), 1, %s672_s16   ;;  %s480_s12 = sshll.u32 (!%p196_p10), %s680_s18, 1 }
  0x16   : > { %s783_s11 = sshll.u32 (!%p196_p10), %s216_s10, 1  ;;  %s310_s24 = scalar_lea.hbm (!%p196_p10), %s888_s3, %s480_s12 }
  0x17   : > { %s794_s5 = sand.u32 (!%p196_p10), 1, %s466_s21   ;;  %s225_s6 = scalar_lea.vmem (!%p196_p10), [#allocation4], %s783_s11 }
  0x18   : > { %s891_s8 = scalar_lea.vmem (!%p196_p10), [#allocation6], %s783_s11  ;;  %s325_s13 = scalar_lea.hbm (!%p196_p10), %s889_s4, %s480_s12 }
  0x19   : > { %s234_s29 = scalar_select %p233_p11, %s680_s18, 1  ;;  %vm246_vm0 = vcmask 1043456   ;;  %vm242_vm1 = vcmask 31744  }
  0x1a   : > { %v240_v0 = vld [vmem:[%s897_s1] sm:$0x3f]  ;;  %s802_s9 = sshll.u32 %s891_s8, 4  ;;  %s218_s14 = scalar_lea.vmem [#allocation2], %s783_s11  ;;  %s328_s9 = int_to_ptr.vmem [resolvable:$true] %s802_s9 }
  0x1b   : > { %s474_s30 = sshll.u32 %s234_s29, 2  ;;  %s808_s29 = sshll.u32 %s310_s24, 4  ;;  %s315_s29 = int_to_ptr.hbm [resolvable:$true] %s808_s29 }
  0x1c   : > { %s239_s7 = scalar_lea.vmem %s896_s0, %s474_s30  ;;  %s295_s30 = scalar_lea.hbm %s887_s2, %s480_s12 }
  0x1d   : > { %v241_v1 = vld [vmem:[%s239_s7] sm:$0xf]  ;;  %s797_s7 = sshll.u32 %s225_s6, 4  ;;  %s297_s0 = sshll.u32 %s218_s14, 4  ;;  %s298_s0 = int_to_ptr.vmem [resolvable:$true] %s297_s0  ;;  %s313_s7 = int_to_ptr.vmem [resolvable:$true] %s797_s7 }
  0x1e   : > { %475 = vmatpush.msk.msra.mxu0 %vm246_vm0, %v241_v1  ;;  %s299_s26 = sshll.u32 %s295_s30, 4  ;;  %s810_s21 = sshll.u32 %s325_s13, 4  ;;  %s300_s26 = int_to_ptr.hbm [resolvable:$true] %s299_s26  ;;  %s330_s21 = int_to_ptr.hbm [resolvable:$true] %s810_s21 }
  0x1f   : > { %476 = vmatmul.msk.f32.vlgmr.msra.gmra.mxu0 %vm242_vm1, %v240_v0  ;;  %s274_s22 = scalar_lea.sflag [#allocation3], %s216_s10  ;;  %s564_s12 = sshra.s32 %s300_s26, 4  ;;  %s565_s12 = int_to_ptr.hbm [resolvable:$true] %s564_s12 }
  0x20   : > { %s566_s30 = scalar_lea.hbm %s565_s12, 2  ;;  %s570_s13 = scalar_lea.hbm %s887_s2, 4 }
  0x21   : > { %p567_p12 = scmp.ne.s32.totalorder %s565_s12, %s566_s30  ;;  %p571_p1 = scmp.lt.s32.totalorder %s565_s12, %s887_s2 }
  0x22   : > { %p572_p2 = scmp.lt.s32.totalorder %s570_s13, %s566_s30 }
  0x23   : > { %p568_p13 = pnand %p567_p12, %p757_p4 }
  0x24   : > { %p573_p3 = por %p572_p2, %p571_p1 }
  0x25   : > { %p569_p0 = pneg %p568_p13 }
  0x27   : > { %p574_p5 = pnand %p573_p3, %p569_p0 }
  0x9c   : > { %v267_v2 = vpop.f32.mrf.mxu0 }
  0x9d   : > { %270 = vst [vmem:[%s218_s14] sm:$0x3] %v267_v2 }
  0x9e   : > { %271 = vst [vmem:[%s225_s6 - $0x2] sm:$0xc] %v267_v2 }
  0x9f   : > { %577 = shalt.err (!%p574_p5)
}
  0xa0   : > { %485 = dma.vmem_to_hbm [thread:$0]  (%p757_p4), %s298_s0, 32, %s300_s26, %s274_s22  }
  0xa1   : > { %s898_s10 = scalar_lea.vmem [#allocation6], %s783_s11  ;;  %s279_s6 = scalar_lea.sflag [#allocation5], %s794_s5 }
  0xa2   : > { %272 = vst [vmem:[%s898_s10 - $0x4] sm:$0x30] %v267_v2  ;;  %s592_s14 = sshra.s32 %s315_s29, 4  ;;  %s598_s12 = scalar_lea.hbm %s888_s3, 4  ;;  %s593_s14 = int_to_ptr.hbm [resolvable:$true] %s592_s14 }
  0xa3   : > { %s594_s24 = scalar_lea.hbm %s593_s14, 2  ;;  %p599_p10 = scmp.lt.s32.totalorder %s593_s14, %s888_s3 }
  0xa4   : > { %p595_p6 = scmp.ne.s32.totalorder %s593_s14, %s594_s24  ;;  %p600_p11 = scmp.lt.s32.totalorder %s598_s12, %s594_s24 }
  0xa6   : > { %p596_p7 = pnand %p595_p6, %p757_p4  ;;  %p601_p12 = por %p600_p11, %p599_p10 }
  0xa8   : > { %p597_p9 = pneg %p596_p7 }
  0xaa   : > { %p602_p13 = pnand %p601_p12, %p597_p9 }
  0xac   : > { %605 = shalt.err (!%p602_p13)
}
  0xad   : > { %486 = dma.vmem_to_hbm [thread:$0]  (%p757_p4), %s313_s7, 32, %s315_s29, %s279_s6  }
  0xae   : > { %s620_s0 = sshra.s32 %s330_s21, 4  ;;  %s626_s22 = scalar_lea.hbm %s889_s4, 4  ;;  %s621_s0 = int_to_ptr.hbm [resolvable:$true] %s620_s0 }
  0xaf   : > { %s622_s11 = scalar_lea.hbm %s621_s0, 2  ;;  %p627_p3 = scmp.lt.s32.totalorder %s621_s0, %s889_s4 }
  0xb0   : > { %p623_p0 = scmp.ne.s32.totalorder %s621_s0, %s622_s11  ;;  %p628_p5 = scmp.lt.s32.totalorder %s626_s22, %s622_s11 }
  0xb2   : > { %p624_p1 = pnand %p623_p0, %p757_p4  ;;  %p629_p6 = por %p628_p5, %p627_p3 }
  0xb4   : > { %p625_p2 = pneg %p624_p1 }
  0xb6   : > { %p630_p7 = pnand %p629_p6, %p625_p2 }
  0xb8   : > { %633 = shalt.err (!%p630_p7)
}
  0xb9   : > { %487 = dma.vmem_to_hbm [thread:$0]  (%p757_p4), %s328_s9, 32, %s330_s21, %s279_s6  }
  0xba PF: > { %p501_p9 = scmp.ge.s32.totalorder %s688_s20, 2  ;;  %s341_s7 = sand.u32 1, %s668_s15  }
  0xbb   : > { %s342_s29 = scalar_lea.sflag [#allocation3], %s341_s7 }
  0xbc   : > { %p492_p10 = pnand %p501_p9, %p766_p8 }
  0xbe   : > { %p493_p11 = pneg %p492_p10 }
  0xc0   : > { %659 = dma.done.wait (%p493_p11), %s342_s29, 32  }
  0xc1   : > { %661 = vsyncadd (%p493_p11), %s342_s29, 4294967264  ;;  %s899_s14 = sadd.s32 4294967294, %s688_s20  }
  0xc2   : > { %s351_s25 = sand.u32 1, %s899_s14  }
  0xc3   : > { %s352_s24 = scalar_lea.sflag [#allocation5], %s351_s25 }
  0xc4   : > { %663 = dma.done.wait (%p493_p11), %s352_s24, 64  }
  0xc5   : > { %665 = vsyncadd (%p493_p11), %s352_s24, 4294967232  ;;  %s21_s20 = sadd.s32 1, %s688_s20   ;;  %s900_s15 = smov %s672_s16 }
  0xc6   : > { %p18_p4 = scmp.ge.s32.totalorder %s21_s20, 4   ;;  %s901_s16 = smov %s676_s17 }
  0xc7   : > { %s902_s17 = smov %s772_s28  ;;  %s903_s18 = smov %s684_s19 }
  0xc8   : > { %s904_s19 = smov %s906_s23  ;;  %20 = sbr.rel (!%p18_p4) target bundleno = 9 (0x9), region = 95 }
  0xcd   :  { %368 = vsyncpa [#allocation3], 1 }
  0xce   :  { %370 = vsyncpa [#allocation3 + $0x1], 1 }
  0xcf   :  { %371 = vsyncpa [#allocation5], 1 }
  0xd0   :  { %373 = vsyncpa [#allocation5 + $0x1], 1 }

</bundles_post_ra>
